<compile_context>
chip_gen: v6e
topology: v6e:2x2x1
jax: 0.10.0
libtpu: 0.0.40
codegen_flags: <defaults>
</compile_context>

<pallas_src>
import math
import jax
import jax.numpy as jnp
from jax.experimental import pallas as pl
from jax.experimental.pallas import tpu as pltpu

ACTIONS = 4
D_MODEL = 32
SIZE = D_MODEL                      # size == N * d_model with N == 1
SEQ = 8                             # ICM batch dim (first dim of the state tensors)
MAX_LEN = 64
HIDDEN = 128                        # transformer FFN hidden size (hiden_size)
V1 = (SIZE + ACTIONS + SIZE) // 2   # 34: Fnet layer1 width
V2 = (V1 + SIZE) // 2               # 33: Fnet layer2 width
G1 = (SIZE * 2 + ACTIONS) // 2      # 34: Gnet layer1 width
FORWARD_SCALE = 1.0
INVERSE_SCALE = 10000.0
LN_EPS = 1e-5

# ---- f32 constants-slab row layout (shared by pack_params and icm_kernel) ----
C_ROWS, C_COLS = 32, 384
ROW_PE = 0                          # rows 0:2*SEQ -> pe[:SEQ] stored twice
ROW_BQKV = 16                       # bq@lanes 0:32, bk@128:160, bv@256:288
ROW_BO = 17
ROW_LN1W, ROW_LN1B = 18, 19
ROW_B1 = 20                         # FFN bias1 (128 lanes)
ROW_B2, ROW_LN2W, ROW_LN2B = 21, 22, 23
ROW_HB1 = 24                        # [fb1 (0:34) | gb1 (34:68)]
ROW_FB2 = 25                        # fb2 (0:33), lane 33 = 0
ROW_GB2 = 26                        # gb2 (0:4)
ROW_FB3 = 27                        # fb3 (0:32)

# ---- bf16 weights-slab layout (rows x cols = 192 x 512) ----
#  rows   0:32  : Wq@0:32  Wk@128:160  Wv@256:288 | W1(FFN)@384:512
#  rows  32:64  : Wo@0:32 | head-L1 state block@128:384
#                 (fw1_state@128:162, gw1_s1@162:196, zeros@256:290, gw1_s2@290:324)
#                 | one-hot block@384:452 (rows 32:36 = fw1_action)
#  rows  64:192 : W2(FFN)@0:32 | head-L2@128:288 (fw2@128:161 rows 64:98,
#                 gw2@256:260 rows 98:132) | Fnet-L3@384:416 rows 64:98 (row 97 = 0)
W_ROWS, W_COLS = 192, 512


def _layernorm(x, w, b):
    # two independent reductions (sum, sum of squares) -> shorter critical path
    inv_d = jnp.float32(1.0 / x.shape[-1])
    mean = jnp.sum(x, axis=-1, keepdims=True) * inv_d
    meansq = jnp.sum(x * x, axis=-1, keepdims=True) * inv_d
    var = jnp.maximum(meansq - mean * mean, 0.0)
    return (x - mean) * jax.lax.rsqrt(var + jnp.float32(LN_EPS)) * w + b


def icm_kernel(data_ref, c_ref, w_ref, err_ref):
    f32 = jnp.float32
    bf16 = jnp.bfloat16
    S = SEQ
    S2 = 2 * SEQ

    data = data_ref[0]                               # (3S, 32) f32
    x12 = data[0:S2, :]                              # rows 0:8 = s1, 8:16 = s2
    oh = data[S2:S2 + S, :]                          # (S, 32), one-hot in cols 0:4

    # ---- constants (single f32 slab) ----
    pe2 = c_ref[0:S2, 0:D_MODEL]                     # pe[:S] stacked twice
    bqkv = c_ref[ROW_BQKV:ROW_BQKV + 1, 0:384]       # one row, QKV-lane layout
    bo = c_ref[ROW_BO:ROW_BO + 1, 0:D_MODEL]
    ln1w = c_ref[ROW_LN1W:ROW_LN1W + 1, 0:D_MODEL]
    ln1b = c_ref[ROW_LN1B:ROW_LN1B + 1, 0:D_MODEL]
    b1 = c_ref[ROW_B1:ROW_B1 + 1, 0:HIDDEN]
    b2 = c_ref[ROW_B2:ROW_B2 + 1, 0:D_MODEL]
    ln2w = c_ref[ROW_LN2W:ROW_LN2W + 1, 0:D_MODEL]
    ln2b = c_ref[ROW_LN2B:ROW_LN2B + 1, 0:D_MODEL]
    b1c = c_ref[ROW_HB1:ROW_HB1 + 1, 0:V1 + G1]      # (1, 68)
    fb2 = c_ref[ROW_FB2:ROW_FB2 + 1, 0:V2 + 1]       # (1, 34), lane 33 = 0
    gb2 = c_ref[ROW_GB2:ROW_GB2 + 1, 0:ACTIONS]
    fb3 = c_ref[ROW_FB3:ROW_FB3 + 1, 0:SIZE]

    # ---- weights (single bf16 slab, all sub-blocks lane/sublane aligned) ----
    wqkv = w_ref[0:32, 0:384]
    w1 = w_ref[0:32, 384:512]
    wo = w_ref[32:64, 0:32]
    wst = w_ref[32:64, 128:384]                      # head-L1 state block (32, 256)
    woh = w_ref[32:64, 384:384 + V1 + G1]            # head-L1 one-hot block (32, 68)
    w2 = w_ref[64:192, 0:32]
    whl2 = w_ref[64:132, 128:288]                    # head-L2 block (68, 160)
    fw3 = w_ref[64:98, 384:416]                      # Fnet L3 (34, 32), row 33 = 0

    sqrt_d = jnp.float32(math.sqrt(D_MODEL))
    inv_sqrt_d = jnp.float32(1.0 / math.sqrt(D_MODEL))

    # ---- single stacked encoder pass over (2S, D) ----
    x = x12 * sqrt_d + pe2                                             # (2S, 32) f32
    qkv = jnp.dot(x.astype(bf16), wqkv, preferred_element_type=f32) + bqkv   # (2S, 384)
    q = qkv[:, 0:D_MODEL]
    k = qkv[:, 128:128 + D_MODEL]
    v = qkv[:, 256:256 + D_MODEL]

    # scores q @ k^T, then block-diagonal mask so s1 / s2 attend only to themselves
    s = jax.lax.dot_general(q.astype(bf16), k.astype(bf16),
                            (((1,), (1,)), ((), ())),
                            preferred_element_type=f32) * inv_sqrt_d   # (2S, 2S)
    ri = jax.lax.broadcasted_iota(jnp.int32, (S2, S2), 0)
    ci = jax.lax.broadcasted_iota(jnp.int32, (S2, S2), 1)
    s = jnp.where((ri < S) == (ci < S), s, jnp.float32(-1e30))
    m = jnp.max(s, axis=-1, keepdims=True)
    e = jnp.exp(s - m)
    attn = e * pl.reciprocal(jnp.sum(e, axis=-1, keepdims=True), approx=True)
    ctx = jnp.dot(attn.astype(bf16), v.astype(bf16), preferred_element_type=f32)
    sa = jnp.dot(ctx.astype(bf16), wo, preferred_element_type=f32) + bo
    # residual + LN, FFN(relu), residual + LN (post-norm)
    src = _layernorm(x + sa, ln1w, ln1b)
    h = jnp.maximum(jnp.dot(src.astype(bf16), w1, preferred_element_type=f32) + b1, 0.0)
    ff = jnp.dot(h.astype(bf16), w2, preferred_element_type=f32) + b2
    enc = _layernorm(src + ff, ln2w, ln2b)                             # (2S, 32)
    s2h = enc[S:S2, :]                                                 # (S, 32)

    # ---- heads: Fnet + Gnet layer1 fused (stacked state matmul + one-hot matmul) ----
    zb = jnp.dot(enc.astype(bf16), wst, preferred_element_type=f32)    # (2S, 256)
    zoh = jnp.dot(oh.astype(bf16), woh, preferred_element_type=f32)    # (S, 68)
    z1 = zb[0:S, 0:V1 + G1] + zb[S:S2, 128:128 + V1 + G1] + zoh + b1c
    z1 = jnp.maximum(z1, 0.0)                                          # (S, 68)

    # layer 2 of both heads in one matmul (Fnet cols 0:33, Gnet cols 128:132)
    z2 = jnp.dot(z1.astype(bf16), whl2, preferred_element_type=f32)    # (S, 160)
    y2 = jnp.maximum(z2[:, 0:V2 + 1] + fb2, 0.0)                       # (S, 34), col 33 = 0
    logits = z2[:, 128:128 + ACTIONS] + gb2                            # (S, 4)

    # Fnet layer3 + forward loss: forward_scale * sum((pred - s2_hat)^2, dim=1)
    pred = jnp.dot(y2.astype(bf16), fw3, preferred_element_type=f32) + fb3
    diff = pred - s2h
    fwd_err = jnp.float32(FORWARD_SCALE) * jnp.sum(diff * diff, axis=1, keepdims=True)

    # Gnet softmax output (probabilities, exact division: feeds the loss), then the
    # reference's CrossEntropy-of-probabilities (log-softmax of p; p in [0,1] so no
    # max-subtraction needed).
    mx = jnp.max(logits, axis=1, keepdims=True)
    e2 = jnp.exp(logits - mx)
    p = e2 / jnp.sum(e2, axis=1, keepdims=True)
    lse = jnp.log(jnp.sum(jnp.exp(p), axis=1, keepdims=True))
    picked = jnp.sum(p * oh[:, 0:ACTIONS], axis=1, keepdims=True)
    inv_err = jnp.float32(INVERSE_SCALE) * (lse - picked)

    # single lane-combined output: col 0 = forward err, col 1 = inverse err
    col = jax.lax.broadcasted_iota(jnp.int32, (S, 2), 1)
    err_ref[0] = jnp.where(col == 0, fwd_err, inv_err)


# ---------------------------------------------------------------------------
# Wrappers
# ---------------------------------------------------------------------------
def pack_step(state1, action, state2):
    """Per-step (3S, D) data slab: rows 0:S = s1, S:2S = s2, 2S:3S = one-hot (padded)."""
    S, N, D = state1.shape
    assert N == 1, "kernel assumes N == 1 (see layout comment)"
    s1 = state1.reshape(S, D)
    s2 = state2.reshape(S, D)
    oh = jax.nn.one_hot(action.reshape(-1).astype(jnp.int32), ACTIONS, dtype=jnp.float32)
    oh = jnp.pad(oh, ((0, 0), (0, D - ACTIONS)))
    return jnp.concatenate([s1, s2, oh], axis=0)


def _icm_pallas(data, consts, weights):
    B = data.shape[0]
    err = pl.pallas_call(
        icm_kernel,
        out_shape=jax.ShapeDtypeStruct((B, SEQ, 2), jnp.float32),
        grid=(B,),
        in_specs=[
            pl.BlockSpec((1, 3 * SEQ, D_MODEL), lambda b: (b, 0, 0)),
            pl.BlockSpec((C_ROWS, C_COLS), lambda b: (0, 0)),   # constant -> VMEM-resident
            pl.BlockSpec((W_ROWS, W_COLS), lambda b: (0, 0)),   # constant -> VMEM-resident
        ],
        out_specs=pl.BlockSpec((1, SEQ, 2), lambda b: (b, 0, 0)),
        compiler_params=pltpu.CompilerParams(dimension_semantics=("parallel",)),
    )(data, consts, weights)
    return err[..., 0:1], err[..., 1:2]


@jax.jit
def icm_forward(state1, action, state2, consts, weights):
    """Single ICM step: state1/state2 (S,1,D), action (S,1) -> ((S,1),(S,1)) losses."""
    data = pack_step(state1, action, state2)[None]
    fwd, inv = _icm_pallas(data, consts, weights)
    return fwd[0], inv[0]


@jax.jit
def icm_forward_batched(data, consts, weights):
    """Batched steps: data (B, 3S, D) from vmap(pack_step); grid axis is 'parallel'."""
    return _icm_pallas(data, consts, weights)


# ---------------------------------------------------------------------------
# Deterministic parameter / PE construction + packing
# ---------------------------------------------------------------------------
def make_pe(max_len, d_model):
    position = jnp.arange(max_len, dtype=jnp.float32)[:, None]
    div_term = jnp.exp(jnp.arange(0, d_model, 2, dtype=jnp.float32)
                       * (-math.log(1000.0) / d_model))   # 1000.0, as in the reference
    pe = jnp.zeros((max_len, d_model), jnp.float32)
    pe = pe.at[:, 0::2].set(jnp.sin(position * div_term))
    pe = pe.at[:, 1::2].set(jnp.cos(position * div_term))
    return pe


def init_params(key):
    keys = jax.random.split(key, 12)

    def lin(k, fan_in, fan_out):
        k1, k2 = jax.random.split(k)
        bound = 1.0 / math.sqrt(fan_in)
        w = jax.random.uniform(k1, (fan_in, fan_out), jnp.float32, -bound, bound)
        b = jax.random.uniform(k2, (1, fan_out), jnp.float32, -bound, bound)
        return w, b

    # transformer encoder layer (nhead=1)
    wq, bq = lin(keys[0], D_MODEL, D_MODEL)
    wk, bk = lin(keys[1], D_MODEL, D_MODEL)
    wv, bv = lin(keys[2], D_MODEL, D_MODEL)
    wo, bo = lin(keys[3], D_MODEL, D_MODEL)
    ln1w = jnp.ones((1, D_MODEL), jnp.float32)
    ln1b = jnp.zeros((1, D_MODEL), jnp.float32)
    w1, b1 = lin(keys[4], D_MODEL, HIDDEN)
    w2, b2 = lin(keys[5], HIDDEN, D_MODEL)
    ln2w = jnp.ones((1, D_MODEL), jnp.float32)
    ln2b = jnp.zeros((1, D_MODEL), jnp.float32)
    enc_raw = (wq, bq, wk, bk, wv, bv, wo, bo,
               ln1w, ln1b, w1, b1, w2, b2, ln2w, ln2b)

    # Fnet / Gnet
    fw1, fb1 = lin(keys[6], SIZE + ACTIONS, V1)
    fw2, fb2 = lin(keys[7], V1, V2)
    fw3, fb3 = lin(keys[8], V2, SIZE)
    gw1, gb1 = lin(keys[9], SIZE * 2, G1)
    gw2, gb2 = lin(keys[10], G1, ACTIONS)
    head_raw = (fw1, fb1, fw2, fb2, fw3, fb3, gw1, gb1, gw2, gb2)
    return enc_raw, head_raw


def pack_params(enc_raw, head_raw, pe_full):
    (wq, bq, wk, bk, wv, bv, wo, bo,
     ln1w, ln1b, w1, b1, w2, b2, ln2w, ln2b) = enc_raw
    (fw1, fb1, fw2, fb2, fw3, fb3, gw1, gb1, gw2, gb2) = head_raw
    assert 2 * SEQ <= ROW_BQKV

    # ---- f32 constants slab (32, 384): 1 DMA for every vector + the PE ----
    c = jnp.zeros((C_ROWS, C_COLS), jnp.float32)
    pe_s = pe_full[:SEQ]
    c = c.at[0:SEQ, 0:D_MODEL].set(pe_s)
    c = c.at[SEQ:2 * SEQ, 0:D_MODEL].set(pe_s)           # stored twice (stacked encode)
    c = c.at[ROW_BQKV, 0:D_MODEL].set(bq[0])
    c = c.at[ROW_BQKV, 128:128 + D_MODEL].set(bk[0])
    c = c.at[ROW_BQKV, 256:256 + D_MODEL].set(bv[0])
    c = c.at[ROW_BO, 0:D_MODEL].set(bo[0])
    c = c.at[ROW_LN1W, 0:D_MODEL].set(ln1w[0])
    c = c.at[ROW_LN1B, 0:D_MODEL].set(ln1b[0])
    c = c.at[ROW_B1, 0:HIDDEN].set(b1[0])
    c = c.at[ROW_B2, 0:D_MODEL].set(b2[0])
    c = c.at[ROW_LN2W, 0:D_MODEL].set(ln2w[0])
    c = c.at[ROW_LN2B, 0:D_MODEL].set(ln2b[0])
    c = c.at[ROW_HB1, 0:V1].set(fb1[0])
    c = c.at[ROW_HB1, V1:V1 + G1].set(gb1[0])
    c = c.at[ROW_FB2, 0:V2].set(fb2[0])
    c = c.at[ROW_GB2, 0:ACTIONS].set(gb2[0])
    c = c.at[ROW_FB3, 0:SIZE].set(fb3[0])

    # ---- bf16 weights slab (192, 512): 1 DMA for every matmul weight ----
    w = jnp.zeros((W_ROWS, W_COLS), jnp.float32)
    # rows 0:32
    w = w.at[0:32, 0:D_MODEL].set(wq)
    w = w.at[0:32, 128:128 + D_MODEL].set(wk)
    w = w.at[0:32, 256:256 + D_MODEL].set(wv)
    w = w.at[0:32, 384:384 + HIDDEN].set(w1)
    # rows 32:64
    w = w.at[32:64, 0:D_MODEL].set(wo)
    w = w.at[32:64, 128:128 + V1].set(fw1[0:SIZE])                 # s1_hat -> Fnet L1
    w = w.at[32:64, 128 + V1:128 + V1 + G1].set(gw1[0:SIZE])       # s1_hat -> Gnet L1
    w = w.at[32:64, 256 + V1:256 + V1 + G1].set(gw1[SIZE:])        # s2_hat -> Gnet L1 (lane+128)
    w = w.at[32:32 + ACTIONS, 384:384 + V1].set(fw1[SIZE:])        # one-hot -> Fnet L1
    # rows 64:192
    w = w.at[64:192, 0:D_MODEL].set(w2)
    w = w.at[64:64 + V1, 128:128 + V2].set(fw2)                    # Fnet L2
    w = w.at[64 + V1:64 + V1 + G1, 256:256 + ACTIONS].set(gw2)     # Gnet L2 (lane+128)
    w = w.at[64:64 + V2, 384:384 + SIZE].set(fw3)                  # Fnet L3 (row 97 stays 0)
    return c, w.astype(jnp.bfloat16)


if __name__ == "__main__":
    key = jax.random.PRNGKey(0)
    k1, k2, k3, kp = jax.random.split(key, 4)

    state1 = jax.random.normal(k1, (SEQ, 1, D_MODEL), jnp.float32)
    state2 = jax.random.normal(k2, (SEQ, 1, D_MODEL), jnp.float32)
    action = jax.random.randint(k3, (SEQ, 1), 0, ACTIONS, jnp.int32)

    enc_raw, head_raw = init_params(kp)
    pe = make_pe(MAX_LEN, D_MODEL)
    consts, weights = pack_params(enc_raw, head_raw, pe)

    # single step (matches the PyTorch module's forward signature / shapes)
    fwd_err, inv_err = icm_forward(state1, action, state2, consts, weights)
    jax.block_until_ready((fwd_err, inv_err))
    assert fwd_err.shape == (SEQ, 1) and inv_err.shape == (SEQ, 1)
    assert bool(jnp.all(jnp.isfinite(fwd_err))) and bool(jnp.all(jnp.isfinite(inv_err)))

    # batched steps: one pallas_call, grid axis "parallel" (2-TC sharding on v7x),
    # weights stay VMEM-resident across grid steps (constant index_map).
    B = 4
    kb = jax.random.split(jax.random.PRNGKey(1), 3)
    s1b = jax.random.normal(kb[0], (B, SEQ, 1, D_MODEL), jnp.float32)
    s2b = jax.random.normal(kb[1], (B, SEQ, 1, D_MODEL), jnp.float32)
    ab = jax.random.randint(kb[2], (B, SEQ, 1), 0, ACTIONS, jnp.int32)
    data_b = jax.vmap(pack_step)(s1b, ab, s2b)
    fwd_b, inv_b = icm_forward_batched(data_b, consts, weights)
    jax.block_until_ready((fwd_b, inv_b))
    assert fwd_b.shape == (B, SEQ, 1) and inv_b.shape == (B, SEQ, 1)
    assert bool(jnp.all(jnp.isfinite(fwd_b))) and bool(jnp.all(jnp.isfinite(inv_b)))

    print("KERNEL_OK")
</pallas_src>

<mosaic_0001>
module attributes {stable_mosaic.version = 11 : i64} {
  func.func @icm_kernel(%arg0: i32, %arg1: memref<1x24x32xf32, #tpu.memory_space<vmem>>, %arg2: memref<32x384xf32, #tpu.memory_space<vmem>>, %arg3: memref<192x512xbf16, #tpu.memory_space<vmem>>, %arg4: memref<1x8x2xf32, #tpu.memory_space<vmem>>) attributes {dimension_semantics = [#tpu.dimension_semantics<parallel>], iteration_bounds = array<i64: 1>, scalar_prefetch = 0 : i64, scratch_operands = 0 : i64, tpu.core_type = #tpu.core_type<tc>, window_params = [{transform_indices = @transform_0, window_bounds = array<i64: 1, 24, 32>}, {pipeline_mode = #tpu.pipeline_mode<synchronous>, transform_indices = @transform_1, window_bounds = array<i64: 32, 384>}, {pipeline_mode = #tpu.pipeline_mode<synchronous>, transform_indices = @transform_2, window_bounds = array<i64: 192, 512>}, {transform_indices = @transform_3, window_bounds = array<i64: 1, 8, 2>}]} {
    %c0 = arith.constant 0 : index
    %c0_0 = arith.constant 0 : index
    %c0_1 = arith.constant 0 : index
    %0 = vector.load %arg1[%c0, %c0_0, %c0_1] : memref<1x24x32xf32, #tpu.memory_space<vmem>>, vector<1x24x32xf32>
    %1 = vector.shape_cast %0 : vector<1x24x32xf32> to vector<24x32xf32>
    %2 = vector.extract_strided_slice %1 {offsets = [0, 0], sizes = [16, 32], strides = [1, 1]} : vector<24x32xf32> to vector<16x32xf32>
    %3 = vector.extract_strided_slice %1 {offsets = [16, 0], sizes = [8, 32], strides = [1, 1]} : vector<24x32xf32> to vector<8x32xf32>
    %c0_2 = arith.constant 0 : index
    %c0_3 = arith.constant 0 : index
    %4 = vector.load %arg2[%c0_2, %c0_3] : memref<32x384xf32, #tpu.memory_space<vmem>>, vector<16x32xf32>
    %c16 = arith.constant 16 : index
    %c0_4 = arith.constant 0 : index
    %5 = vector.load %arg2[%c16, %c0_4] : memref<32x384xf32, #tpu.memory_space<vmem>>, vector<1x384xf32>
    %c17 = arith.constant 17 : index
    %c0_5 = arith.constant 0 : index
    %6 = vector.load %arg2[%c17, %c0_5] : memref<32x384xf32, #tpu.memory_space<vmem>>, vector<1x32xf32>
    %c18 = arith.constant 18 : index
    %c0_6 = arith.constant 0 : index
    %7 = vector.load %arg2[%c18, %c0_6] : memref<32x384xf32, #tpu.memory_space<vmem>>, vector<1x32xf32>
    %c19 = arith.constant 19 : index
    %c0_7 = arith.constant 0 : index
    %8 = vector.load %arg2[%c19, %c0_7] : memref<32x384xf32, #tpu.memory_space<vmem>>, vector<1x32xf32>
    %c20 = arith.constant 20 : index
    %c0_8 = arith.constant 0 : index
    %9 = vector.load %arg2[%c20, %c0_8] : memref<32x384xf32, #tpu.memory_space<vmem>>, vector<1x128xf32>
    %c21 = arith.constant 21 : index
    %c0_9 = arith.constant 0 : index
    %10 = vector.load %arg2[%c21, %c0_9] : memref<32x384xf32, #tpu.memory_space<vmem>>, vector<1x32xf32>
    %c22 = arith.constant 22 : index
    %c0_10 = arith.constant 0 : index
    %11 = vector.load %arg2[%c22, %c0_10] : memref<32x384xf32, #tpu.memory_space<vmem>>, vector<1x32xf32>
    %c23 = arith.constant 23 : index
    %c0_11 = arith.constant 0 : index
    %12 = vector.load %arg2[%c23, %c0_11] : memref<32x384xf32, #tpu.memory_space<vmem>>, vector<1x32xf32>
    %c24 = arith.constant 24 : index
    %c0_12 = arith.constant 0 : index
    %13 = vector.load %arg2[%c24, %c0_12] : memref<32x384xf32, #tpu.memory_space<vmem>>, vector<1x68xf32>
    %c25 = arith.constant 25 : index
    %c0_13 = arith.constant 0 : index
    %14 = vector.load %arg2[%c25, %c0_13] : memref<32x384xf32, #tpu.memory_space<vmem>>, vector<1x34xf32>
    %c26 = arith.constant 26 : index
    %c0_14 = arith.constant 0 : index
    %15 = vector.load %arg2[%c26, %c0_14] : memref<32x384xf32, #tpu.memory_space<vmem>>, vector<1x4xf32>
    %c27 = arith.constant 27 : index
    %c0_15 = arith.constant 0 : index
    %16 = vector.load %arg2[%c27, %c0_15] : memref<32x384xf32, #tpu.memory_space<vmem>>, vector<1x32xf32>
    %c0_16 = arith.constant 0 : index
    %c0_17 = arith.constant 0 : index
    %17 = vector.load %arg3[%c0_16, %c0_17] : memref<192x512xbf16, #tpu.memory_space<vmem>>, vector<32x384xbf16>
    %c0_18 = arith.constant 0 : index
    %c384 = arith.constant 384 : index
    %18 = vector.load %arg3[%c0_18, %c384] : memref<192x512xbf16, #tpu.memory_space<vmem>>, vector<32x128xbf16>
    %c32 = arith.constant 32 : index
    %c0_19 = arith.constant 0 : index
    %19 = vector.load %arg3[%c32, %c0_19] : memref<192x512xbf16, #tpu.memory_space<vmem>>, vector<32x32xbf16>
    %c32_20 = arith.constant 32 : index
    %c128 = arith.constant 128 : index
    %20 = vector.load %arg3[%c32_20, %c128] : memref<192x512xbf16, #tpu.memory_space<vmem>>, vector<32x256xbf16>
    %c32_21 = arith.constant 32 : index
    %c384_22 = arith.constant 384 : index
    %21 = vector.load %arg3[%c32_21, %c384_22] : memref<192x512xbf16, #tpu.memory_space<vmem>>, vector<32x68xbf16>
    %c64 = arith.constant 64 : index
    %c0_23 = arith.constant 0 : index
    %22 = vector.load %arg3[%c64, %c0_23] : memref<192x512xbf16, #tpu.memory_space<vmem>>, vector<128x32xbf16>
    %c64_24 = arith.constant 64 : index
    %c128_25 = arith.constant 128 : index
    %23 = vector.load %arg3[%c64_24, %c128_25] : memref<192x512xbf16, #tpu.memory_space<vmem>>, vector<68x160xbf16>
    %c64_26 = arith.constant 64 : index
    %c384_27 = arith.constant 384 : index
    %24 = vector.load %arg3[%c64_26, %c384_27] : memref<192x512xbf16, #tpu.memory_space<vmem>>, vector<34x32xbf16>
    %cst = arith.constant 5.65685415 : f32
    %25 = vector.broadcast %cst : f32 to vector<16x32xf32>
    %26 = arith.mulf %2, %25 : vector<16x32xf32>
    %27 = arith.addf %26, %4 : vector<16x32xf32>
    %28 = arith.truncf %27 : vector<16x32xf32> to vector<16x32xbf16>
    %cst_28 = arith.constant dense<0.000000e+00> : vector<16x384xf32>
    %29 = tpu.matmul %28, %17, %cst_28 {dimension_numbers = #tpu.dot_dimension_numbers<[1], [0], [0], [1], [0, 0, 1, 1], [], []>} : vector<16x32xbf16>, vector<32x384xbf16>, vector<16x384xf32> -> vector<16x384xf32>
    %30 = vector.broadcast %5 : vector<1x384xf32> to vector<16x384xf32>
    %31 = arith.addf %29, %30 : vector<16x384xf32>
    %32 = vector.extract_strided_slice %31 {offsets = [0, 0], sizes = [16, 32], strides = [1, 1]} : vector<16x384xf32> to vector<16x32xf32>
    %33 = vector.extract_strided_slice %31 {offsets = [0, 128], sizes = [16, 32], strides = [1, 1]} : vector<16x384xf32> to vector<16x32xf32>
    %34 = vector.extract_strided_slice %31 {offsets = [0, 256], sizes = [16, 32], strides = [1, 1]} : vector<16x384xf32> to vector<16x32xf32>
    %35 = arith.truncf %32 : vector<16x32xf32> to vector<16x32xbf16>
    %36 = arith.truncf %33 : vector<16x32xf32> to vector<16x32xbf16>
    %cst_29 = arith.constant dense<0.000000e+00> : vector<16x16xf32>
    %37 = tpu.matmul %35, %36, %cst_29 {dimension_numbers = #tpu.dot_dimension_numbers<[1], [1], [0], [0], [0, 0, 1, 0], [], []>} : vector<16x32xbf16>, vector<16x32xbf16>, vector<16x16xf32> -> vector<16x16xf32>
    %cst_30 = arith.constant 0.176776692 : f32
    %38 = vector.broadcast %cst_30 : f32 to vector<16x16xf32>
    %39 = arith.mulf %37, %38 : vector<16x16xf32>
    %40 = tpu.iota {dimensions = array<i32: 0>} : vector<16x16xi32>
    %41 = tpu.iota {dimensions = array<i32: 1>} : vector<16x16xi32>
    %c8_i32 = arith.constant 8 : i32
    %42 = vector.broadcast %c8_i32 : i32 to vector<16x16xi32>
    %43 = arith.cmpi slt, %40, %42 : vector<16x16xi32>
    %c8_i32_31 = arith.constant 8 : i32
    %44 = vector.broadcast %c8_i32_31 : i32 to vector<16x16xi32>
    %45 = arith.cmpi slt, %41, %44 : vector<16x16xi32>
    %46 = arith.xori %43, %45 : vector<16x16xi1>
    %cst_32 = arith.constant dense<true> : vector<16x16xi1>
    %47 = arith.xori %46, %cst_32 : vector<16x16xi1>
    %cst_33 = arith.constant -1.000000e+30 : f32
    %48 = vector.broadcast %cst_33 : f32 to vector<16x16xf32>
    %49 = arith.select %47, %39, %48 : vector<16x16xi1>, vector<16x16xf32>
    %cst_34 = arith.constant dense<0xFF800000> : vector<16xf32>
    %50 = vector.multi_reduction <maximumf>, %49, %cst_34 [1] : vector<16x16xf32> to vector<16xf32>
    %51 = vector.shape_cast %50 : vector<16xf32> to vector<16x1xf32>
    %52 = vector.broadcast %51 : vector<16x1xf32> to vector<16x16xf32>
    %53 = arith.subf %49, %52 : vector<16x16xf32>
    %54 = math.exp %53 : vector<16x16xf32>
    %cst_35 = arith.constant dense<0.000000e+00> : vector<16xf32>
    %55 = vector.multi_reduction <add>, %54, %cst_35 [1] : vector<16x16xf32> to vector<16xf32>
    %56 = vector.shape_cast %55 : vector<16xf32> to vector<16x1xf32>
    %57 = tpu.reciprocal %56 {approx = true} : vector<16x1xf32> -> vector<16x1xf32>
    %58 = vector.broadcast %57 : vector<16x1xf32> to vector<16x16xf32>
    %59 = arith.mulf %54, %58 : vector<16x16xf32>
    %60 = arith.truncf %59 : vector<16x16xf32> to vector<16x16xbf16>
    %61 = arith.truncf %34 : vector<16x32xf32> to vector<16x32xbf16>
    %cst_36 = arith.constant dense<0.000000e+00> : vector<16x32xf32>
    %62 = tpu.matmul %60, %61, %cst_36 {dimension_numbers = #tpu.dot_dimension_numbers<[1], [0], [0], [1], [0, 0, 1, 1], [], []>} : vector<16x16xbf16>, vector<16x32xbf16>, vector<16x32xf32> -> vector<16x32xf32>
    %63 = arith.truncf %62 : vector<16x32xf32> to vector<16x32xbf16>
    %cst_37 = arith.constant dense<0.000000e+00> : vector<16x32xf32>
    %64 = tpu.matmul %63, %19, %cst_37 {dimension_numbers = #tpu.dot_dimension_numbers<[1], [0], [0], [1], [0, 0, 1, 1], [], []>} : vector<16x32xbf16>, vector<32x32xbf16>, vector<16x32xf32> -> vector<16x32xf32>
    %65 = vector.broadcast %6 : vector<1x32xf32> to vector<16x32xf32>
    %66 = arith.addf %64, %65 : vector<16x32xf32>
    %67 = arith.addf %27, %66 : vector<16x32xf32>
    %cst_38 = arith.constant dense<0.000000e+00> : vector<16xf32>
    %68 = vector.multi_reduction <add>, %67, %cst_38 [1] : vector<16x32xf32> to vector<16xf32>
    %69 = vector.shape_cast %68 : vector<16xf32> to vector<16x1xf32>
    %cst_39 = arith.constant 3.125000e-02 : f32
    %70 = vector.broadcast %cst_39 : f32 to vector<16x1xf32>
    %71 = arith.mulf %69, %70 : vector<16x1xf32>
    %72 = arith.mulf %67, %67 : vector<16x32xf32>
    %cst_40 = arith.constant dense<0.000000e+00> : vector<16xf32>
    %73 = vector.multi_reduction <add>, %72, %cst_40 [1] : vector<16x32xf32> to vector<16xf32>
    %74 = vector.shape_cast %73 : vector<16xf32> to vector<16x1xf32>
    %cst_41 = arith.constant 3.125000e-02 : f32
    %75 = vector.broadcast %cst_41 : f32 to vector<16x1xf32>
    %76 = arith.mulf %74, %75 : vector<16x1xf32>
    %77 = arith.mulf %71, %71 : vector<16x1xf32>
    %78 = arith.subf %76, %77 : vector<16x1xf32>
    %cst_42 = arith.constant 0.000000e+00 : f32
    %79 = vector.broadcast %cst_42 : f32 to vector<16x1xf32>
    %80 = arith.maximumf %78, %79 : vector<16x1xf32>
    %81 = vector.broadcast %71 : vector<16x1xf32> to vector<16x32xf32>
    %82 = arith.subf %67, %81 : vector<16x32xf32>
    %cst_43 = arith.constant 9.99999974E-6 : f32
    %83 = vector.broadcast %cst_43 : f32 to vector<16x1xf32>
    %84 = arith.addf %80, %83 : vector<16x1xf32>
    %85 = math.rsqrt %84 : vector<16x1xf32>
    %86 = vector.broadcast %85 : vector<16x1xf32> to vector<16x32xf32>
    %87 = arith.mulf %82, %86 : vector<16x32xf32>
    %88 = vector.broadcast %7 : vector<1x32xf32> to vector<16x32xf32>
    %89 = arith.mulf %87, %88 : vector<16x32xf32>
    %90 = vector.broadcast %8 : vector<1x32xf32> to vector<16x32xf32>
    %91 = arith.addf %89, %90 : vector<16x32xf32>
    %92 = arith.truncf %91 : vector<16x32xf32> to vector<16x32xbf16>
    %cst_44 = arith.constant dense<0.000000e+00> : vector<16x128xf32>
    %93 = tpu.matmul %92, %18, %cst_44 {dimension_numbers = #tpu.dot_dimension_numbers<[1], [0], [0], [1], [0, 0, 1, 1], [], []>} : vector<16x32xbf16>, vector<32x128xbf16>, vector<16x128xf32> -> vector<16x128xf32>
    %94 = vector.broadcast %9 : vector<1x128xf32> to vector<16x128xf32>
    %95 = arith.addf %93, %94 : vector<16x128xf32>
    %cst_45 = arith.constant 0.000000e+00 : f32
    %96 = vector.broadcast %cst_45 : f32 to vector<16x128xf32>
    %97 = arith.maximumf %95, %96 : vector<16x128xf32>
    %98 = arith.truncf %97 : vector<16x128xf32> to vector<16x128xbf16>
    %cst_46 = arith.constant dense<0.000000e+00> : vector<16x32xf32>
    %99 = tpu.matmul %98, %22, %cst_46 {dimension_numbers = #tpu.dot_dimension_numbers<[1], [0], [0], [1], [0, 0, 1, 1], [], []>} : vector<16x128xbf16>, vector<128x32xbf16>, vector<16x32xf32> -> vector<16x32xf32>
    %100 = vector.broadcast %10 : vector<1x32xf32> to vector<16x32xf32>
    %101 = arith.addf %99, %100 : vector<16x32xf32>
    %102 = arith.addf %91, %101 : vector<16x32xf32>
    %cst_47 = arith.constant dense<0.000000e+00> : vector<16xf32>
    %103 = vector.multi_reduction <add>, %102, %cst_47 [1] : vector<16x32xf32> to vector<16xf32>
    %104 = vector.shape_cast %103 : vector<16xf32> to vector<16x1xf32>
    %cst_48 = arith.constant 3.125000e-02 : f32
    %105 = vector.broadcast %cst_48 : f32 to vector<16x1xf32>
    %106 = arith.mulf %104, %105 : vector<16x1xf32>
    %107 = arith.mulf %102, %102 : vector<16x32xf32>
    %cst_49 = arith.constant dense<0.000000e+00> : vector<16xf32>
    %108 = vector.multi_reduction <add>, %107, %cst_49 [1] : vector<16x32xf32> to vector<16xf32>
    %109 = vector.shape_cast %108 : vector<16xf32> to vector<16x1xf32>
    %cst_50 = arith.constant 3.125000e-02 : f32
    %110 = vector.broadcast %cst_50 : f32 to vector<16x1xf32>
    %111 = arith.mulf %109, %110 : vector<16x1xf32>
    %112 = arith.mulf %106, %106 : vector<16x1xf32>
    %113 = arith.subf %111, %112 : vector<16x1xf32>
    %cst_51 = arith.constant 0.000000e+00 : f32
    %114 = vector.broadcast %cst_51 : f32 to vector<16x1xf32>
    %115 = arith.maximumf %113, %114 : vector<16x1xf32>
    %116 = vector.broadcast %106 : vector<16x1xf32> to vector<16x32xf32>
    %117 = arith.subf %102, %116 : vector<16x32xf32>
    %cst_52 = arith.constant 9.99999974E-6 : f32
    %118 = vector.broadcast %cst_52 : f32 to vector<16x1xf32>
    %119 = arith.addf %115, %118 : vector<16x1xf32>
    %120 = math.rsqrt %119 : vector<16x1xf32>
    %121 = vector.broadcast %120 : vector<16x1xf32> to vector<16x32xf32>
    %122 = arith.mulf %117, %121 : vector<16x32xf32>
    %123 = vector.broadcast %11 : vector<1x32xf32> to vector<16x32xf32>
    %124 = arith.mulf %122, %123 : vector<16x32xf32>
    %125 = vector.broadcast %12 : vector<1x32xf32> to vector<16x32xf32>
    %126 = arith.addf %124, %125 : vector<16x32xf32>
    %127 = vector.extract_strided_slice %126 {offsets = [8, 0], sizes = [8, 32], strides = [1, 1]} : vector<16x32xf32> to vector<8x32xf32>
    %128 = arith.truncf %126 : vector<16x32xf32> to vector<16x32xbf16>
    %cst_53 = arith.constant dense<0.000000e+00> : vector<16x256xf32>
    %129 = tpu.matmul %128, %20, %cst_53 {dimension_numbers = #tpu.dot_dimension_numbers<[1], [0], [0], [1], [0, 0, 1, 1], [], []>} : vector<16x32xbf16>, vector<32x256xbf16>, vector<16x256xf32> -> vector<16x256xf32>
    %130 = arith.truncf %3 : vector<8x32xf32> to vector<8x32xbf16>
    %cst_54 = arith.constant dense<0.000000e+00> : vector<8x68xf32>
    %131 = tpu.matmul %130, %21, %cst_54 {dimension_numbers = #tpu.dot_dimension_numbers<[1], [0], [0], [1], [0, 0, 1, 1], [], []>} : vector<8x32xbf16>, vector<32x68xbf16>, vector<8x68xf32> -> vector<8x68xf32>
    %132 = vector.extract_strided_slice %129 {offsets = [0, 0], sizes = [8, 68], strides = [1, 1]} : vector<16x256xf32> to vector<8x68xf32>
    %133 = vector.extract_strided_slice %129 {offsets = [8, 128], sizes = [8, 68], strides = [1, 1]} : vector<16x256xf32> to vector<8x68xf32>
    %134 = arith.addf %132, %133 : vector<8x68xf32>
    %135 = arith.addf %134, %131 : vector<8x68xf32>
    %136 = vector.broadcast %13 : vector<1x68xf32> to vector<8x68xf32>
    %137 = arith.addf %135, %136 : vector<8x68xf32>
    %cst_55 = arith.constant 0.000000e+00 : f32
    %138 = vector.broadcast %cst_55 : f32 to vector<8x68xf32>
    %139 = arith.maximumf %137, %138 : vector<8x68xf32>
    %140 = arith.truncf %139 : vector<8x68xf32> to vector<8x68xbf16>
    %cst_56 = arith.constant dense<0.000000e+00> : vector<8x160xf32>
    %141 = tpu.matmul %140, %23, %cst_56 {dimension_numbers = #tpu.dot_dimension_numbers<[1], [0], [0], [1], [0, 0, 1, 1], [], []>} : vector<8x68xbf16>, vector<68x160xbf16>, vector<8x160xf32> -> vector<8x160xf32>
    %142 = vector.extract_strided_slice %141 {offsets = [0, 0], sizes = [8, 34], strides = [1, 1]} : vector<8x160xf32> to vector<8x34xf32>
    %143 = vector.broadcast %14 : vector<1x34xf32> to vector<8x34xf32>
    %144 = arith.addf %142, %143 : vector<8x34xf32>
    %cst_57 = arith.constant 0.000000e+00 : f32
    %145 = vector.broadcast %cst_57 : f32 to vector<8x34xf32>
    %146 = arith.maximumf %144, %145 : vector<8x34xf32>
    %147 = vector.extract_strided_slice %141 {offsets = [0, 128], sizes = [8, 4], strides = [1, 1]} : vector<8x160xf32> to vector<8x4xf32>
    %148 = vector.broadcast %15 : vector<1x4xf32> to vector<8x4xf32>
    %149 = arith.addf %147, %148 : vector<8x4xf32>
    %150 = arith.truncf %146 : vector<8x34xf32> to vector<8x34xbf16>
    %cst_58 = arith.constant dense<0.000000e+00> : vector<8x32xf32>
    %151 = tpu.matmul %150, %24, %cst_58 {dimension_numbers = #tpu.dot_dimension_numbers<[1], [0], [0], [1], [0, 0, 1, 1], [], []>} : vector<8x34xbf16>, vector<34x32xbf16>, vector<8x32xf32> -> vector<8x32xf32>
    %152 = vector.broadcast %16 : vector<1x32xf32> to vector<8x32xf32>
    %153 = arith.addf %151, %152 : vector<8x32xf32>
    %154 = arith.subf %153, %127 : vector<8x32xf32>
    %155 = arith.mulf %154, %154 : vector<8x32xf32>
    %cst_59 = arith.constant dense<0.000000e+00> : vector<8xf32>
    %156 = vector.multi_reduction <add>, %155, %cst_59 [1] : vector<8x32xf32> to vector<8xf32>
    %157 = vector.shape_cast %156 : vector<8xf32> to vector<8x1xf32>
    %cst_60 = arith.constant 1.000000e+00 : f32
    %158 = vector.broadcast %cst_60 : f32 to vector<8x1xf32>
    %159 = arith.mulf %158, %157 : vector<8x1xf32>
    %cst_61 = arith.constant dense<0xFF800000> : vector<8xf32>
    %160 = vector.multi_reduction <maximumf>, %149, %cst_61 [1] : vector<8x4xf32> to vector<8xf32>
    %161 = vector.shape_cast %160 : vector<8xf32> to vector<8x1xf32>
    %162 = vector.broadcast %161 : vector<8x1xf32> to vector<8x4xf32>
    %163 = arith.subf %149, %162 : vector<8x4xf32>
    %164 = math.exp %163 : vector<8x4xf32>
    %cst_62 = arith.constant dense<0.000000e+00> : vector<8xf32>
    %165 = vector.multi_reduction <add>, %164, %cst_62 [1] : vector<8x4xf32> to vector<8xf32>
    %166 = vector.shape_cast %165 : vector<8xf32> to vector<8x1xf32>
    %167 = vector.broadcast %166 : vector<8x1xf32> to vector<8x4xf32>
    %168 = arith.divf %164, %167 : vector<8x4xf32>
    %169 = math.exp %168 : vector<8x4xf32>
    %cst_63 = arith.constant dense<0.000000e+00> : vector<8xf32>
    %170 = vector.multi_reduction <add>, %169, %cst_63 [1] : vector<8x4xf32> to vector<8xf32>
    %171 = vector.shape_cast %170 : vector<8xf32> to vector<8x1xf32>
    %172 = math.log %171 : vector<8x1xf32>
    %173 = vector.extract_strided_slice %3 {offsets = [0, 0], sizes = [8, 4], strides = [1, 1]} : vector<8x32xf32> to vector<8x4xf32>
    %174 = arith.mulf %168, %173 : vector<8x4xf32>
    %cst_64 = arith.constant dense<0.000000e+00> : vector<8xf32>
    %175 = vector.multi_reduction <add>, %174, %cst_64 [1] : vector<8x4xf32> to vector<8xf32>
    %176 = vector.shape_cast %175 : vector<8xf32> to vector<8x1xf32>
    %177 = arith.subf %172, %176 : vector<8x1xf32>
    %cst_65 = arith.constant 1.000000e+04 : f32
    %178 = vector.broadcast %cst_65 : f32 to vector<8x1xf32>
    %179 = arith.mulf %178, %177 : vector<8x1xf32>
    %180 = tpu.iota {dimensions = array<i32: 1>} : vector<8x2xi32>
    %c0_i32 = arith.constant 0 : i32
    %181 = vector.broadcast %c0_i32 : i32 to vector<8x2xi32>
    %182 = arith.cmpi eq, %180, %181 : vector<8x2xi32>
    %183 = vector.shape_cast %159 : vector<8x1xf32> to vector<8x1xf32>
    %184 = vector.broadcast %183 : vector<8x1xf32> to vector<8x2xf32>
    %185 = vector.shape_cast %179 : vector<8x1xf32> to vector<8x1xf32>
    %186 = vector.broadcast %185 : vector<8x1xf32> to vector<8x2xf32>
    %187 = arith.select %182, %184, %186 : vector<8x2xi1>, vector<8x2xf32>
    %c0_66 = arith.constant 0 : index
    %c0_67 = arith.constant 0 : index
    %c0_68 = arith.constant 0 : index
    %188 = vector.load %arg4[%c0_66, %c0_67, %c0_68] : memref<1x8x2xf32, #tpu.memory_space<vmem>>, vector<1x8x2xf32>
    %189 = vector.shape_cast %188 : vector<1x8x2xf32> to vector<8x2xf32>
    %190 = vector.shape_cast %187 : vector<8x2xf32> to vector<1x8x2xf32>
    tpu.vector_store %arg4[%c0_66, %c0_67, %c0_68], %190 {strides = array<i32>} : memref<1x8x2xf32, #tpu.memory_space<vmem>>, vector<1x8x2xf32>,
    return
  }
  func.func @transform_0(%arg0: i32) -> (i32, i32, i32) {
    %c0_i32 = arith.constant 0 : i32
    %c0_i32_0 = arith.constant 0 : i32
    %c0_i32_1 = arith.constant 0 : i32
    return %arg0, %c0_i32, %c0_i32_0 : i32, i32, i32
  }
  func.func @transform_1(%arg0: i32) -> (i32, i32) {
    %c0_i32 = arith.constant 0 : i32
    %c0_i32_0 = arith.constant 0 : i32
    %c0_i32_1 = arith.constant 0 : i32
    return %c0_i32, %c0_i32_0 : i32, i32
  }
  func.func @transform_2(%arg0: i32) -> (i32, i32) {
    %c0_i32 = arith.constant 0 : i32
    %c0_i32_0 = arith.constant 0 : i32
    %c0_i32_1 = arith.constant 0 : i32
    return %c0_i32, %c0_i32_0 : i32, i32
  }
  func.func @transform_3(%arg0: i32) -> (i32, i32, i32) {
    %c0_i32 = arith.constant 0 : i32
    %c0_i32_0 = arith.constant 0 : i32
    %c0_i32_1 = arith.constant 0 : i32
    return %arg0, %c0_i32, %c0_i32_0 : i32, i32, i32
  }
}

</mosaic_0001>

<bundles_post_ra>
// kernel: icm_forward.1
= control target key start
LH: loop header
LB: loop body
LE: loop exit
PB: predicated region body
PF: predicated region fallthrough
CT: control target
= control target key end

     0   :  { %8 = vsyncpa [#allocation3], 0  ;;  %s1416_s0 = inlined_call_operand.vmem [shape: f32[1,24,32], index: 0, kind: input, shape index: {}]   ;;  %s1417_s1 = inlined_call_operand.hbm [shape: f32[32,384], index: 1, kind: input, shape index: {}]   ;;  %s1418_s2 = inlined_call_operand.hbm [shape: bf16[192,512], index: 2, kind: input, shape index: {}]   ;;  %s1419_s3 = inlined_call_operand.vmem [shape: f32[1,8,2], index: 3, kind: output, shape index: {}]  }
   0x1   :  { %9 = vsyncpa [#allocation5], 0  ;;  %s1276_s12 = smov [#allocation2]  }
   0x2   :  { %s17_s13 = sshll.u32 %s1276_s12, 4  ;;  %s18_s13 = int_to_ptr.vmem [resolvable:$true] %s17_s13 }
   0x3   :  { %s1240_s14 = scalar_lea.vmem %s18_s13, 1536  ;;  %p1245_p1 = scmp.lt.s32.totalorder %s18_s13, %s18_s13 }
   0x4   :  { %p1241_p0 = scmp.ne.s32.totalorder %s18_s13, %s1240_s14  ;;  %p1246_p2 = scmp.lt.s32.totalorder %s1240_s14, %s1240_s14 }
   0x6   :  { %p1247_p3 = por %p1246_p2, %p1245_p1 }
   0x8   :  { %p1248_p4 = pnand %p1247_p3, %p1241_p0 }
   0xa   :  { %1251 = shalt.err (!%p1248_p4)
}
   0xb   :  { %s1277_s15 = smov 384   ;;  %s1278_s16 = smov 24  }
   0xc   :  { %23 = dma.hbm_to_vmem [thread:$0]  %s1417_s1, 1536, %s18_s13, [#allocation3], %s1277_s15, %s1277_s15, %s1278_s16  }
   0xd   :  { %s1279_s19 = smov [#allocation4]  }
   0xe   :  { %s29_s20 = sshll.u32 %s1279_s19, 4  ;;  %s30_s20 = int_to_ptr.vmem [resolvable:$true] %s29_s20 }
   0xf   :  { %s1260_s21 = scalar_lea.vmem %s30_s20, 6144  ;;  %p1265_p6 = scmp.lt.s32.totalorder %s30_s20, %s30_s20 }
  0x10   :  { %p1261_p5 = scmp.ne.s32.totalorder %s30_s20, %s1260_s21  ;;  %p1266_p7 = scmp.lt.s32.totalorder %s1260_s21, %s1260_s21 }
  0x12   :  { %p1267_p8 = por %p1266_p7, %p1265_p6 }
  0x14   :  { %p1268_p9 = pnand %p1267_p8, %p1261_p5 }
  0x16   :  { %1271 = shalt.err (!%p1268_p9)
}
  0x17   :  { %s1280_s22 = smov 256   ;;  %s1281_s23 = smov 16  }
  0x18   :  { %35 = dma.hbm_to_vmem [thread:$0]  %s1418_s2, 6144, %s30_s20, [#allocation5], %s1280_s22, %s1280_s22, %s1281_s23  }
  0x19   :  { %1272 = dma.done.wait [#allocation3], 1536  }
  0x1a   :  { %1273 = vsyncadd [#allocation3], 4294965760 }
  0x1b   :  { %1274 = dma.done.wait [#allocation5], 6144  }
  0x1c   :  { %1275 = vsyncadd [#allocation5], 4294961152  ;;  %v1282_v0 = vmov 0   ;;  %v1163_v1 = vld [vmem:[#allocation4 + $0x24] ss:$16 sps:$4 sm:$0xff]   ;;  %v44_v6 = vld [vmem:[%s1416_s0 + $0x8] sm:$0xff]  ;;  %v121_v15 = vlaneseq }
  0x1d   :  { %204 = vmatprep.mubr.bf16.mxu0 %v1282_v0  ;;  %v1165_v2 = vld [vmem:[#allocation4 + $0x20] ss:$16 sps:$4 sm:$0xff]   ;;  %184 = vmatprep.subr.bf16.mxu0 %v1163_v1  ;;  %v1166_v3 = vld [vmem:[#allocation4 + $0x4] ss:$16 sps:$4 sm:$0xff]   ;;  %v47_v8 = vld [vmem:[#allocation2 + $0x18] sm:$0xff]  ;;  %vm168_vm0 = vcmask 261120  }
  0x1e   :  { %v1168_v4 = vld [vmem:[#allocation4] ss:$16 sps:$4 sm:$0xff]   ;;  %185 = vmatpush1.bf16.msra.mxu0 %v1165_v2  ;;  %v116_v10 = vmul.f32 5.656854, %v44_v6  ;;  %v1283_v14 = vmov 0.0   ;;  %vm1284_vm1 = vmmov 0  }
  0x1f   :  { %v43_v5 = vld [vmem:[%s1416_s0] sm:$0xff]  ;;  %186 = vmatprep.subr.bf16.mxu0 %v1166_v3  ;;  %1079 = vmatprep.subr.bf16.mxu1 %v1283_v14  ;;  %v1332_v16 = vshrl.u32 %v121_v15, 7  ;;  %v1169_v33 = vld [vmem:[#allocation4 + $0x28] ss:$16 sps:$4 sm:$0xff]   ;;  %v1346_v35 = vand.u32 127, %v121_v15  ;;  %vm1285_vm3 = vmmov 1  }
  0x20   :  { %v46_v7 = vld [vmem:[#allocation2] sm:$0xff]  ;;  %v115_v9 = vmul.f32 5.656854, %v43_v5  ;;  %v1321_v12 = vadd.f32 %v116_v10, %v47_v8  ;;  %1083 = vmatprep.mubr.msk.bf16.mxu1 %vm1284_vm1, %v1283_v14  ;;  %1080 = vmatpush3.bf16.msra.mxu1 %v1169_v33  ;;  %v1170_v34 = vld [vmem:[#allocation4 + $0x8] ss:$16 sps:$4 sm:$0xff]   ;;  %vm321_vm6 = vcmask 130048  }
  0x21   :  { %v127_v17 = vsub.s32 1, %v1332_v16  ;;  %v49_v19 = vld [vmem:[#allocation2 + $0x30] ss:$8 sm:$0x7]  ;;  %v123_v24 = vsub.s32 0, %v1332_v16  ;;  %1081 = vmatprep.subr.bf16.mxu1 %v1283_v14  ;;  %vm314_vm2 = vcmp.lt.s32.totalorder %v1346_v35, 8 }
  0x22   :  { %v1319_v11 = vadd.f32 %v115_v9, %v46_v7  ;;  %187 = vmatpush1.bf16.msra.mxu0 %v1168_v4  ;;  %vm315_vm4 = vmxor %vm1285_vm3, %vm314_vm2  ;;  %v131_v56 = vsub.s32 2, %v1332_v16  ;;  %v1171_v9 = vld [vmem:[#allocation4 + $0x60] ss:$16 sps:$4 sm:$0xff]   ;;  %vm847_vm8 = vcmask 1041408   ;;  %vm918_vm9 = vcmask 1040384  }
  0x23   :  { %1087 = vmatprep.subr.bf16.mxu0 %v1283_v14  ;;  %v128_v21 = vrot.slane %v49_v19, %v127_v17  ;;  %v124_v28 = vrot.slane %v49_v19, %v123_v24  ;;  %vm317_vm5 = vmxor %vm315_vm4, %vm1285_vm3  ;;  %v1172_v10 = vld [vmem:[#allocation4 + $0x40] ss:$16 sps:$4 sm:$0xff]   ;;  %vm843_vm10 = vcmask 556032   ;;  %vm967_vm11 = vcmask 31744  }
  0x24   :  { %v119_v13 = vpack.c.bf16 %v1321_v12, %v1319_v11  ;;  %1082 = vmatpush3.bf16.msra.mxu1 %v1170_v34  ;;  %vm318_vm7 = vmxor %vm314_vm2, %vm1285_vm3  ;;  %v132_v58 = vrot.slane %v49_v19, %v131_v56  ;;  %v50_v19 = vld [vmem:[#allocation2 + $0x31] ss:$0 sm:$0xff]  ;;  %v1174_v34 = vld [vmem:[#allocation4 + $0xc] ss:$16 sps:$4 sm:$0xff]   ;;  %vm914_vm12 = vcmask 277504   ;;  %vm992_vm13 = vcmp.eq.s32.totalorder %v1346_v35, 0 }
  0x25   :  { %1093 = vmatprep.subr.bf16.mxu1 %v1283_v14  ;;  %vm994_vm14 = vcmask 15360  }
  0x26   :  { %1008 = vmatmul.mubr.msk.bf16.vlgmr.msra.gmra.mxu0 %vm168_vm0, %v119_v13 }
  0x27   :  { %1089 = vmatprep.mubr.msk.bf16.mxu0 %vm1284_vm1, %v1283_v14  ;;  %1084 = vmatmul.mubr.msk.bf16.vlgmr.msra.gmra.mxu1 %vm168_vm0, %v119_v13 }
  0x28   :  { %1095 = vmatprep.mubr.msk.bf16.mxu1 %vm1284_vm1, %v1283_v14 }
  0xe6   :  { %v206_v18 = vpop.f32.mrf.mxu0 }
  0xe7   :  { %v207_v31 = vadd.f32 %v206_v18, %v124_v28  ;;  %v249_v57 = vpop.f32.mrf.mxu1 }
  0xe8   :  { %v208_v20 = vpop.f32.mrf.mxu0  ;;  %v250_v60 = vadd.f32 %v249_v57, %v132_v58 }
  0xe9   :  { %v209_v25 = vadd.f32 %v208_v20, %v128_v21  ;;  %v1085_v59 = vpop.f32.mrf.mxu1 }
  0xea   :  { %v210_v22 = vpop.f32.mrf.mxu0  ;;  %v51_v59 = vld [vmem:[#allocation2 + $0x32] ss:$0 sm:$0xff] }
  0xeb   :  { %v211_v30 = vadd.f32 %v210_v22, %v124_v28  ;;  %v252_v61 = vpop.f32.mrf.mxu1 }
  0xec   :  { %v212_v23 = vpop.f32.mrf.mxu0  ;;  %v253_v62 = vadd.f32 %v252_v61, %v132_v58 }
  0xed   :  { %v213_v26 = vadd.f32 %v212_v23, %v128_v21  ;;  %v256_v32 = vpack.c.bf16 %v211_v30, %v207_v31  ;;  %v1086_v63 = vpop.f32.mrf.mxu1 }
  0xee   :  { %v345_v1 = vpack.c.bf16 %v253_v62, %v250_v60 }
  0xef   :  { %v257_v27 = vpack.c.bf16 %v213_v26, %v209_v25 }
  0xf0   :  { %1094 = vmatpush3.bf16.msra.mxu1 %v345_v1  ;;  %v52_v1 = vld [vmem:[#allocation2 + $0x33] ss:$0 sm:$0xff] }
  0xf1   :  { %v262_v29 = vsel %vm168_vm0, %v257_v27, 0  ;;  %1107 = vmatprep.subr.bf16.mxu1 %v1283_v14 }
  0xf2   :  { %1088 = vmatpush3.bf16.xpose.msra.mxu0 %v262_v29 }
  0xf3   :  { %1099 = vmatprep.subr.bf16.mxu0 %v1283_v14 }
  0xf9   :  { %1090 = vmatmul.mubr.msk.bf16.vlgmr.msra.gmra.mxu0 %vm168_vm0, %v256_v32 }
  0xfa   :  { %1103 = vmatprep.mubr.msk.bf16.mxu0 %vm1284_vm1, %v1283_v14  ;;  %1100 = vmatpush3.bf16.msra.mxu0 %v1171_v9  ;;  %v53_v9 = vld [vmem:[#allocation2 + $0x34] ss:$0 sm:$0xff] }
  0xfb   :  { %1101 = vmatprep.subr.bf16.mxu0 %v1283_v14 }
  0xfe   :  { %1102 = vmatpush3.bf16.msra.mxu0 %v1172_v10 }
  0xff   :  { %1115 = vmatprep.subr.bf16.mxu0 %v1283_v14 }
 0x1b9   :  { %v298_v36 = vpop.f32.mrf.mxu0 }
 0x1ba   :  { %v305_v37 = vmul.f32 0.17677669, %v298_v36  ;;  %v1175_v36 = vld [vmem:[#allocation4 + $0x160] ss:$16 sps:$4 sm:$0xff]  }
 0x1bb   :  { %v1091_v38 = vpop.f32.mrf.mxu0 }
 0x1bc   :  { %v319_v39 = vsel %vm317_vm5, %v305_v37, -1e+30  ;;  %v1176_v37 = vld [vmem:[#allocation4 + $0x140] ss:$16 sps:$4 sm:$0xff]  }
 0x1bd   :  { %v301_v40 = vpop.f32.mrf.mxu0  ;;  %v322_v41 = vsel %vm321_vm6, %v319_v39, -inf  ;;  %v1178_v38 = vld [vmem:[#allocation4 + $0x100] ss:$16 sps:$4 sm:$0xff]  }
 0x1be   :  { %v306_v42 = vmul.f32 0.17677669, %v301_v40  ;;  %323 = vmax.xlane.f32.xlu0 %v322_v41 }
 0x1bf   :  { %v1092_v43 = vpop.f32.mrf.mxu0 }
 0x1c0   :  { %v320_v44 = vsel %vm318_vm7, %v306_v42, -1e+30 }
 0x1c1   :  { %v325_v45 = vsel %vm321_vm6, %v320_v44, -inf }
 0x1c2   :  { %326 = vmax.xlane.f32.xlu0 %v325_v45 }
 0x247   :  { %v324_v46 = vpop.xlane.xlu0 %323 }
 0x248   :  { %v328_v47 = vsub.f32 %v319_v39, %v324_v46  ;;  %v1179_v39 = vld [vmem:[#allocation4 + $0xe0] ss:$16 sps:$4 sm:$0xff]  }
 0x24a   :  { %v330_v48 = vmul.f32 1.442695, %v328_v47 }
 0x24b   :  { %v327_v49 = vpop.xlane.xlu0 %326 }
 0x24c   :  { %1208 = vpow2.f32 %v330_v48  ;;  %v329_v50 = vsub.f32 %v320_v44, %v327_v49 }
 0x24e   :  { %v332_v51 = vmul.f32 1.442695, %v329_v50 }
 0x250   :  { %1210 = vpow2.f32 %v332_v51 }
 0x259   :  { %v1209_v52 = vpop.eup %1208 }
 0x25a   :  { %v334_v53 = vsel %vm321_vm6, %v1209_v52, 0.0 }
 0x25b   :  { %335 = vadd.xlane.f32.xlu1 %v334_v53 }
 0x25d   :  { %v1211_v54 = vpop.eup %1210 }
 0x25e   :  { %v337_v55 = vsel %vm321_vm6, %v1211_v54, 0.0 }
 0x25f   :  { %338 = vadd.xlane.f32.xlu1 %v337_v55 }
 0x2e4   :  { %v336_v2 = vpop.xlane.xlu1 %335 }
 0x2e5   :  { %1212 = vrcp.f32 %v336_v2 }
 0x2e8   :  { %v339_v3 = vpop.xlane.xlu1 %338 }
 0x2e9   :  { %1214 = vrcp.f32 %v339_v3 }
 0x2f2   :  { %v1213_v4 = vpop.eup %1212 }
 0x2f3   :  { %v342_v6 = vmul.f32 %v1213_v4, %v1209_v52 }
 0x2f6   :  { %v1215_v5 = vpop.eup %1214 }
 0x2f7   :  { %v343_v7 = vmul.f32 %v1215_v5, %v1211_v54 }
 0x2f9   :  { %v344_v8 = vpack.c.bf16 %v343_v7, %v342_v6  ;;  %v1180_v6 = vld [vmem:[#allocation4 + $0xc0] ss:$16 sps:$4 sm:$0xff]  }
 0x2fa   :  { %v1181_v7 = vld [vmem:[#allocation4 + $0xa0] ss:$16 sps:$4 sm:$0xff]  }
 0x2fb   :  { %1096 = vmatmul.mubr.msk.bf16.vlgmr.msra.gmra.mxu1 %vm321_vm6, %v344_v8  ;;  %v1182_v8 = vld [vmem:[#allocation4 + $0x80] ss:$16 sps:$4 sm:$0xff]  }
 0x2fc   :  { %1111 = vmatprep.mubr.msk.bf16.mxu1 %vm1284_vm1, %v1283_v14 }
 0x3bb   :  { %v383_v13 = vpop.f32.mrf.mxu1 }
 0x3bd   :  { %v1097_v15 = vpop.f32.mrf.mxu1 }
 0x3bf   :  { %v386_v16 = vpop.f32.mrf.mxu1 }
 0x3c0   :  { %v390_v17 = vpack.c.bf16 %v386_v16, %v383_v13 }
 0x3c1   :  { %v1098_v18 = vpop.f32.mrf.mxu1 }
 0x3c2   :  { %1104 = vmatmul.mubr.msk.bf16.vlgmr.msra.gmra.mxu0 %vm168_vm0, %v390_v17 }
 0x3c3   :  { %1131 = vmatprep.mubr.msk.bf16.mxu0 %vm1284_vm1, %v1283_v14  ;;  %1116 = vmatpush3.bf16.msra.mxu0 %v1175_v36 }
 0x3c4   :  { %1117 = vmatprep.subr.bf16.mxu0 %v1283_v14 }
 0x3c7   :  { %1118 = vmatpush3.bf16.msra.mxu0 %v1176_v37  ;;  %v1183_v37 = vld [vmem:[#allocation4 + $0x64] ss:$16 sps:$4 sm:$0xff]  }
 0x3c8   :  { %1119 = vmatprep.subr.bf16.mxu0 %v1283_v14 }
 0x482   :  { %v440_v20 = vpop.f32.mrf.mxu0 }
 0x483   :  { %v441_v21 = vadd.f32 %v440_v20, %v50_v19 }
 0x484   :  { %v1105_v22 = vpop.f32.mrf.mxu0 }
 0x485   :  { %v447_v23 = vadd.f32 %v441_v21, %v1319_v11  ;;  %v1173_v11 = vld [vmem:[#allocation4 + $0x2c] ss:$16 sps:$4 sm:$0xff]   ;;  %v54_v22 = vld [vmem:[#allocation2 + $0x35] ss:$0 sm:$0xff] }
 0x486   :  { %v443_v24 = vpop.f32.mrf.mxu0  ;;  %1108 = vmatpush3.bf16.msra.mxu1 %v1173_v11 }
 0x487   :  { %v444_v25 = vadd.f32 %v443_v24, %v50_v19  ;;  %v449_v26 = vsel %vm168_vm0, %v447_v23, 0.0  ;;  %v457_v27 = vmul.f32 %v447_v23, %v447_v23  ;;  %1109 = vmatprep.subr.bf16.mxu1 %v1283_v14 }
 0x488   :  { %450 = vadd.xlane.f32.xlu0 %v449_v26  ;;  %v1106_v28 = vpop.f32.mrf.mxu0 }
 0x489   :  { %v448_v29 = vadd.f32 %v444_v25, %v1321_v12  ;;  %v459_v30 = vsel %vm168_vm0, %v457_v27, 0.0  ;;  %v1177_v12 = vld [vmem:[#allocation4 + $0x120] ss:$16 sps:$4 sm:$0xff]  }
 0x48a   :  { %1110 = vmatpush3.bf16.msra.mxu1 %v1174_v34  ;;  %1120 = vmatpush3.bf16.msra.mxu0 %v1177_v12  ;;  %v1185_v12 = vld [vmem:[#allocation4 + $0x68] ss:$16 sps:$4 sm:$0xff]  }
 0x48b   :  { %v452_v31 = vsel %vm168_vm0, %v448_v29, 0.0  ;;  %v458_v32 = vmul.f32 %v448_v29, %v448_v29  ;;  %1121 = vmatprep.subr.bf16.mxu0 %v1283_v14  ;;  %708 = vmatprep.subr.bf16.mxu1 %v1185_v12 }
 0x48c   :  { %460 = vadd.xlane.f32.xlu0 %v459_v30  ;;  %453 = vadd.xlane.f32.xlu1 %v452_v31 }
 0x48d   :  { %v462_v33 = vsel %vm168_vm0, %v458_v32, 0.0 }
 0x48e   :  { %1122 = vmatpush3.bf16.msra.mxu0 %v1178_v38  ;;  %v1188_v38 = vld [vmem:[#allocation4 + $0x48] ss:$16 sps:$4 sm:$0xff]  }
 0x48f   :  { %1123 = vmatprep.subr.bf16.mxu0 %v1283_v14 }
 0x490   :  { %463 = vadd.xlane.f32.xlu1 %v462_v33 }
 0x492   :  { %1124 = vmatpush3.bf16.msra.mxu0 %v1179_v39  ;;  %v1186_v39 = vld [vmem:[#allocation4 + $0x44] ss:$16 sps:$4 sm:$0xff]  }
 0x493   :  { %1125 = vmatprep.subr.bf16.mxu0 %v1283_v14 }
 0x496   :  { %1126 = vmatpush3.bf16.msra.mxu0 %v1180_v6 }
 0x497   :  { %1127 = vmatprep.subr.bf16.mxu0 %v1283_v14 }
 0x49a   :  { %1128 = vmatpush3.bf16.msra.mxu0 %v1181_v7  ;;  %v109_v7 = vld [vmem:[#allocation4 + $0x104] sm:$0x33] }
 0x49b   :  { %1129 = vmatprep.subr.bf16.mxu0 %v1283_v14 }
 0x49e   :  { %1130 = vmatpush3.bf16.msra.mxu0 %v1182_v8  ;;  %v1190_v8 = vld [vmem:[#allocation4 + $0x4c] ss:$16 sps:$4 sm:$0xff]  }
 0x49f   :  { %1143 = vmatprep.subr.bf16.mxu0 %v1283_v14 }
 0x511   :  { %v451_v40 = vpop.xlane.xlu0 %450 }
 0x512   :  { %v455_v41 = vmul.f32 0.03125, %v451_v40 }
 0x514   :  { %v467_v44 = vmul.f32 %v455_v41, %v455_v41  ;;  %v473_v56 = vsub.f32 %v447_v23, %v455_v41 }
 0x515   :  { %v461_v42 = vpop.xlane.xlu0 %460  ;;  %v454_v43 = vpop.xlane.xlu1 %453 }
 0x516   :  { %v465_v45 = vmul.f32 0.03125, %v461_v42  ;;  %v456_v46 = vmul.f32 0.03125, %v454_v43 }
 0x518   :  { %v469_v47 = vsub.f32 %v465_v45, %v467_v44  ;;  %v468_v50 = vmul.f32 %v456_v46, %v456_v46  ;;  %v474_v60 = vsub.f32 %v448_v29, %v456_v46 }
 0x519   :  { %v464_v48 = vpop.xlane.xlu1 %463 }
 0x51a   :  { %v471_v49 = vmax.f32 %v469_v47, 0.0  ;;  %v466_v51 = vmul.f32 0.03125, %v464_v48 }
 0x51c   :  { %v475_v52 = vadd.f32 1e-05, %v471_v49  ;;  %v470_v53 = vsub.f32 %v466_v51, %v468_v50 }
 0x51e   :  { %1216 = vrsqrt.f32 %v475_v52  ;;  %v472_v54 = vmax.f32 %v470_v53, 0.0 }
 0x520   :  { %v476_v55 = vadd.f32 1e-05, %v472_v54 }
 0x522   :  { %1218 = vrsqrt.f32 %v476_v55 }
 0x52b   :  { %v1217_v57 = vpop.eup %1216 }
 0x52c   :  { %v479_v58 = vmul.f32 %v1217_v57, %v473_v56 }
 0x52e   :  { %v481_v63 = vmul.f32 %v479_v58, %v51_v59 }
 0x52f   :  { %v1219_v61 = vpop.eup %1218 }
 0x530   :  { %v480_v62 = vmul.f32 %v1219_v61, %v474_v60  ;;  %v483_v3 = vadd.f32 %v481_v63, %v52_v1 }
 0x532   :  { %v482_v2 = vmul.f32 %v480_v62, %v51_v59  ;;  %v55_v59 = vld [vmem:[#allocation2 + $0x36] ss:$0 sm:$0xff] }
 0x534   :  { %v484_v4 = vadd.f32 %v482_v2, %v52_v1  ;;  %v56_v1 = vld [vmem:[#allocation2 + $0x37] ss:$0 sm:$0xff] }
 0x536   :  { %v485_v5 = vpack.c.bf16 %v484_v4, %v483_v3 }
 0x538   :  { %1112 = vmatmul.mubr.msk.bf16.vlgmr.msra.gmra.mxu1 %vm168_vm0, %v485_v5  ;;  %v1189_v5 = vld [vmem:[#allocation4 + $0x6c] ss:$16 sps:$4 sm:$0xff]  }
 0x539   :  { %728 = vmatprep.mubr.bf16.mxu1 %v1282_v0  ;;  %709 = vmatpush1.bf16.msra.mxu1 %v1183_v37 }
 0x53a   :  { %710 = vmatprep.subr.bf16.mxu1 %v1188_v38 }
 0x53d   :  { %711 = vmatpush1.bf16.msra.mxu1 %v1186_v39  ;;  %v1206_v39 = vld [vmem:[#allocation4 + $0xac] ss:$16 sps:$4 sm:$0xff]  }
 0x53e   :  { %1135 = vmatprep.subr.bf16.mxu1 %v1283_v14 }
 0x5f8   :  { %v535_v10 = vpop.f32.mrf.mxu1 }
 0x5f9   :  { %v536_v15 = vadd.f32 %v535_v10, %v53_v9  ;;  %v1043_v10 = vcombine.high %v109_v7, %v109_v7 }
 0x5fa   :  { %v1113_v13 = vpop.f32.mrf.mxu1 }
 0x5fb   :  { %v542_v19 = vmax.f32 %v536_v15, 0.0  ;;  %v1042_v13 = vcombine.low %v109_v7, %v109_v7 }
 0x5fc   :  { %v538_v16 = vpop.f32.mrf.mxu1 }
 0x5fd   :  { %v539_v17 = vadd.f32 %v538_v16, %v53_v9  ;;  %v1396_v9 = vld [vmem:[%s1416_s0 + $0x10] sm:$0xff]  ;;  %v849_v16 = vsel %vm847_vm8, %v1042_v13, 0 }
 0x5fe   :  { %v1114_v18 = vpop.f32.mrf.mxu1  ;;  %v737_v15 = vpack.c.bf16 %v1396_v9, %v1396_v9 }
 0x5ff   :  { %v543_v20 = vmax.f32 %v539_v17, 0.0  ;;  %v1195_v17 = vld [vmem:[#allocation4 + $0xe8] ss:$16 sps:$4 sm:$0xff]   ;;  %v1193_v18 = vld [vmem:[#allocation4 + $0xe4] ss:$16 sps:$4 sm:$0xff]  }
 0x601   :  { %v544_v21 = vpack.c.bf16 %v543_v20, %v542_v19  ;;  %v1198_v19 = vld [vmem:[#allocation4 + $0xc8] ss:$16 sps:$4 sm:$0xff]   ;;  %v1196_v20 = vld [vmem:[#allocation4 + $0xc4] ss:$16 sps:$4 sm:$0xff]  }
 0x603   :  { %1132 = vmatmul.mubr.bf16.vlgmr.msra.gmra.mxu0 %v544_v21  ;;  %v1201_v21 = vld [vmem:[#allocation4 + $0xa8] ss:$16 sps:$4 sm:$0xff]  }
 0x604   :  { %1149 = vmatprep.mubr.msk.bf16.mxu0 %vm1284_vm1, %v1283_v14 }
 0x6c3   :  { %v627_v23 = vpop.f32.mrf.mxu0 }
 0x6c4   :  { %v628_v24 = vadd.f32 %v627_v23, %v54_v22  ;;  %v1204_v23 = vld [vmem:[#allocation4 + $0x88] ss:$16 sps:$4 sm:$0xff]  }
 0x6c5   :  { %v1133_v25 = vpop.f32.mrf.mxu0 }
 0x6c6   :  { %v634_v26 = vadd.f32 %v628_v24, %v483_v3  ;;  %v1202_v24 = vld [vmem:[#allocation4 + $0x84] ss:$16 sps:$4 sm:$0xff]   ;;  %v1205_v25 = vld [vmem:[#allocation4 + $0xcc] ss:$0 sps:$4 sm:$0x11]  }
 0x6c7   :  { %v630_v27 = vpop.f32.mrf.mxu0 }
 0x6c8   :  { %v631_v28 = vadd.f32 %v630_v27, %v54_v22  ;;  %v636_v29 = vsel %vm168_vm0, %v634_v26, 0.0  ;;  %v644_v30 = vmul.f32 %v634_v26, %v634_v26  ;;  %v1199_v22 = vld [vmem:[#allocation4 + $0xa4] ss:$16 sps:$4 sm:$0xff]  }
 0x6c9   :  { %637 = vadd.xlane.f32.xlu0 %v636_v29  ;;  %v1134_v31 = vpop.f32.mrf.mxu0 }
 0x6ca   :  { %v635_v32 = vadd.f32 %v631_v28, %v484_v4  ;;  %v646_v33 = vsel %vm168_vm0, %v644_v30, 0.0  ;;  %v57_v31 = vld [vmem:[#allocation2 + $0x48] ss:$0 sm:$0xff] }
 0x6cc   :  { %v639_v11 = vsel %vm168_vm0, %v635_v32, 0.0  ;;  %v645_v34 = vmul.f32 %v635_v32, %v635_v32 }
 0x6cd   :  { %647 = vadd.xlane.f32.xlu0 %v646_v33  ;;  %640 = vadd.xlane.f32.xlu1 %v639_v11 }
 0x6ce   :  { %v649_v36 = vsel %vm168_vm0, %v645_v34, 0.0 }
 0x6d1   :  { %650 = vadd.xlane.f32.xlu1 %v649_v36 }
 0x752   :  { %v638_v40 = vpop.xlane.xlu0 %637 }
 0x753   :  { %v642_v41 = vmul.f32 0.03125, %v638_v40  ;;  %v1207_v40 = vld [vmem:[#allocation4 + $0x8c] ss:$16 sps:$4 sm:$0xff]  }
 0x755   :  { %v654_v44 = vmul.f32 %v642_v41, %v642_v41  ;;  %v660_v56 = vsub.f32 %v634_v26, %v642_v41  ;;  %v920_v26 = vsel %vm918_vm9, %v1205_v25, 0  ;;  %v58_v41 = vld [vmem:[#allocation2 + $0x49] ss:$0 sm:$0xff] }
 0x756   :  { %v648_v42 = vpop.xlane.xlu0 %647  ;;  %v641_v43 = vpop.xlane.xlu1 %640  ;;  %1144 = vmatpush3.bf16.msra.mxu0 %v920_v26 }
 0x757   :  { %v652_v45 = vmul.f32 0.03125, %v648_v42  ;;  %v643_v46 = vmul.f32 0.03125, %v641_v43  ;;  %1145 = vmatprep.subr.bf16.mxu0 %v1283_v14  ;;  %v59_v43 = vld [vmem:[#allocation2 + $0x4a] ss:$0 sm:$0xff] }
 0x759   :  { %v656_v47 = vsub.f32 %v652_v45, %v654_v44  ;;  %v655_v50 = vmul.f32 %v643_v46, %v643_v46  ;;  %v661_v60 = vsub.f32 %v635_v32, %v643_v46 }
 0x75a   :  { %v651_v48 = vpop.xlane.xlu1 %650  ;;  %1146 = vmatpush3.bf16.msra.mxu0 %v1206_v39 }
 0x75b   :  { %v658_v49 = vmax.f32 %v656_v47, 0.0  ;;  %v653_v51 = vmul.f32 0.03125, %v651_v48  ;;  %1147 = vmatprep.subr.bf16.mxu0 %v1283_v14 }
 0x75d   :  { %v662_v52 = vadd.f32 1e-05, %v658_v49  ;;  %v657_v53 = vsub.f32 %v653_v51, %v655_v50 }
 0x75e   :  { %1148 = vmatpush3.bf16.msra.mxu0 %v1207_v40 }
 0x75f   :  { %1220 = vrsqrt.f32 %v662_v52  ;;  %v659_v54 = vmax.f32 %v657_v53, 0.0 }
 0x761   :  { %v663_v55 = vadd.f32 1e-05, %v659_v54 }
 0x763   :  { %1222 = vrsqrt.f32 %v663_v55 }
 0x76c   :  { %v1221_v57 = vpop.eup %1220 }
 0x76d   :  { %v666_v58 = vmul.f32 %v1221_v57, %v660_v56 }
 0x76f   :  { %v668_v63 = vmul.f32 %v666_v58, %v55_v59 }
 0x770   :  { %v1223_v61 = vpop.eup %1222 }
 0x771   :  { %v667_v62 = vmul.f32 %v1223_v61, %v661_v60  ;;  %v670_v3 = vadd.f32 %v668_v63, %v56_v1 }
 0x773   :  { %v669_v2 = vmul.f32 %v667_v62, %v55_v59 }
 0x775   :  { %v1387_v4 = vadd.f32 %v669_v2, %v56_v1 }
 0x777   :  { %v672_v6 = vpack.c.bf16 %v1387_v4, %v670_v3  ;;  %v60_v3 = vld [vmem:[#allocation2 + $0x4b] ss:$0 sm:$0xff] }
 0x779   :  { %1030 = vmatmul.mubr.msk.bf16.vlgmr.msra.gmra.mxu1 %vm168_vm0, %v672_v6 }
 0x77a   :  { %1136 = vmatpush3.bf16.msra.mxu1 %v1189_v5  ;;  %1139 = vmatprep.mubr.msk.bf16.mxu1 %vm1284_vm1, %v1283_v14 }
 0x77b   :  { %1137 = vmatprep.subr.bf16.mxu1 %v1283_v14 }
 0x77e   :  { %1138 = vmatpush3.bf16.msra.mxu1 %v1190_v8 }
 0x77f   :  { %1044 = vmatprep.subr.msk.bf16.mxu1 %vm847_vm8, %v1043_v10 }
 0x781   :  { %1140 = vmatmul.mubr.msk.bf16.vlgmr.msra.gmra.mxu1 %vm168_vm0, %v737_v15 }
 0x782   :  { %861 = vmatpush1.bf16.msra.mxu1 %v849_v16  ;;  %886 = vmatprep.mubr.bf16.mxu1 %v1282_v0 }
 0x783   :  { %862 = vmatprep.subr.bf16.mxu1 %v1195_v17 }
 0x786   :  { %863 = vmatpush1.bf16.msra.mxu1 %v1193_v18 }
 0x787   :  { %864 = vmatprep.subr.bf16.mxu1 %v1198_v19 }
 0x78a   :  { %865 = vmatpush1.bf16.msra.mxu1 %v1196_v20 }
 0x78b   :  { %866 = vmatprep.subr.bf16.mxu1 %v1201_v21 }
 0x78e   :  { %867 = vmatpush1.bf16.msra.mxu1 %v1199_v22 }
 0x78f   :  { %868 = vmatprep.subr.bf16.mxu1 %v1204_v23 }
 0x792   :  { %869 = vmatpush1.bf16.msra.mxu1 %v1202_v24 }
 0x839   :  { %v730_v0 = vpop.f32.mrf.mxu1 }
 0x83b   :  { %v732_v27 = vpop.f32.mrf.mxu1 }
 0x83d   :  { %v733_v28 = vpop.f32.mrf.mxu1 }
 0x83f   :  { %v734_v29 = vpop.f32.mrf.mxu1 }
 0x840   :  { %v793_v30 = vadd.f32 %v734_v29, %v730_v0 }
 0x841   :  { %v787_v32 = vpop.f32.mrf.mxu1 }
 0x842   :  { %v794_v33 = vadd.f32 %v793_v30, %v787_v32 }
 0x843   :  { %v1141_v11 = vpop.f32.mrf.mxu1 }
 0x844   :  { %v795_v34 = vadd.f32 %v794_v33, %v57_v31 }
 0x845   :  { %v790_v36 = vpop.f32.mrf.mxu1 }
 0x846   :  { %v796_v37 = vmax.f32 %v795_v34, 0.0 }
 0x847   :  { %v1142_v12 = vpop.f32.mrf.mxu1 }
 0x848   :  { %v797_v38 = vpack.c.bf16 %v796_v37, %v796_v37 }
 0x84a   :  { %1045 = vmatmul.mubr.msk.bf16.vlgmr.msra.gmra.mxu1 %vm843_vm10, %v797_v38 }
 0x90a   :  { %v888_v42 = vpop.f32.mrf.mxu1 }
 0x90b   :  { %v895_v44 = vadd.f32 %v888_v42, %v58_v41 }
 0x90c   :  { %v890_v45 = vpop.f32.mrf.mxu1 }
 0x90d   :  { %v896_v46 = vmax.f32 %v895_v44, 0.0  ;;  %v897_v47 = vadd.f32 %v890_v45, %v59_v43 }
 0x90e   :  { %v892_v48 = vpop.f32.mrf.mxu1 }
 0x90f   :  { %v898_v49 = vpack.c.bf16 %v896_v46, %v896_v46  ;;  %v968_v50 = vsel %vm967_vm11, %v897_v47, -inf }
 0x910   :  { %969 = vmax.xlane.f32.xlu0 %v968_v50  ;;  %v893_v51 = vpop.f32.mrf.mxu1 }
 0x911   :  { %1150 = vmatmul.mubr.msk.bf16.vlgmr.msra.gmra.mxu0 %vm914_vm12, %v898_v49 }
 0x999   :  { %v970_v52 = vpop.xlane.xlu0 %969 }
 0x99a   :  { %v971_v14 = vsub.f32 %v897_v47, %v970_v52 }
 0x99c   :  { %v972_v53 = vmul.f32 1.442695, %v971_v14 }
 0x99e   :  { %1224 = vpow2.f32 %v972_v53 }
 0x9ab   :  { %v1225_v54 = vpop.eup %1224 }
 0x9ac   :  { %v974_v55 = vsel %vm967_vm11, %v1225_v54, 0.0 }
 0x9ad   :  { %975 = vadd.xlane.f32.xlu1 %v974_v55 }
 0x9d1   :  { %v956_v56 = vpop.f32.mrf.mxu0 }
 0x9d2   :  { %v957_v5 = vadd.f32 %v956_v56, %v60_v3 }
 0x9d3   :  { %v1151_v57 = vpop.f32.mrf.mxu0 }
 0x9d4   :  { %v962_v6 = vsub.f32 %v957_v5, %v1387_v4 }
 0x9d5   :  { %v959_v58 = vpop.f32.mrf.mxu0 }
 0x9d6   :  { %v963_v10 = vmul.f32 %v962_v6, %v962_v6 }
 0x9d7   :  { %v1152_v59 = vpop.f32.mrf.mxu0 }
 0x9d8   :  { %v964_v13 = vsel %vm168_vm0, %v963_v10, 0.0 }
 0xa36   :  { %v976_v60 = vpop.xlane.xlu1 %975 }
 0xa37   :  { %1226 = vrcp.f32 %v976_v60 }
 0xa44   :  { %v1227_v61 = vpop.eup %1226 }
 0xa45   :  { %v978_v62 = vmul.f32 %v1227_v61, %v1225_v54 }
 0xa47   :  { %v986_v63 = vmul.f32 %v978_v62, %v1396_v9  ;;  %v979_v1 = vmul.f32 1.442695, %v978_v62 }
 0xa49   :  { %v987_v2 = vsel %vm967_vm11, %v986_v63, 0.0  ;;  %1228 = vpow2.f32 %v979_v1 }
 0xa4a   :  { %988 = vadd.xlane.f32.xlu1 %v987_v2 }
 0xa56   :  { %v1229_v7 = vpop.eup %1228 }
 0xa57   :  { %v981_v8 = vsel %vm967_vm11, %v1229_v7, 0.0 }
 0xa58   :  { %982 = vadd.xlane.f32.xlu0 %v981_v8 }
 0xa5c   :  { %965 = vadd.xlane.f32.xlu0 %v964_v13 }
 0xad3   :  { %v989_v17 = vpop.xlane.xlu1 %988 }
 0xae1   :  { %v983_v15 = vpop.xlane.xlu0 %982 }
 0xae2   :  { %1230 = vlog2.f32 %v983_v15 }
 0xae5   :  { %v966_v20 = vpop.xlane.xlu0 %965 }
 0xaef   :  { %v1231_v9 = vpop.eup %1230 }
 0xaf0   :  { %v985_v16 = vmul.f32 0.6931472, %v1231_v9 }
 0xaf2   :  { %v990_v18 = vsub.f32 %v985_v16, %v989_v17 }
 0xaf4   :  { %v991_v19 = vmul.f32 10000.0, %v990_v18 }
 0xaf6   :  { %v993_v4 = vsel %vm992_vm13, %v966_v20, %v991_v19 }
 0xaf7   :  { %995 = vst.msk [vmem:[%s1419_s3] sm:$0xff] %vm994_vm14, %v993_v4 }
 0xaf8   :  { %1000 = vsyncpa [#allocation3], 1 }
 0xaf9   :  { %1001 = vsyncpa [#allocation5], 1 }

</bundles_post_ra>
